<compile_context>
chip_gen: v7x
topology: tpu7x:2x2x1
jax: 0.10.0
libtpu: 0.0.40
codegen_flags: <defaults>
</compile_context>

<pallas_src>
import functools

import jax
import jax.numpy as jnp
from jax.experimental import pallas as pl
from jax.experimental.pallas import tpu as pltpu


LANE = 128
ROW_TILE = 512    # A_hat row tile (sublane axis)
K_TILE = 2048     # A_hat column / reduction tile (lane axis)


def _round_up(x, m):
    return (x + m - 1) // m * m


def _tile_plan(n):
    """Pick (npad, tm, tk): big tiles for big graphs, shrink for tiny ones."""
    r = _round_up(n, LANE)
    tm, tk = ROW_TILE, K_TILE
    while tm > LANE and tm >= 2 * r:
        tm //= 2
    while tk > LANE and tk >= 2 * r:
        tk //= 2
    # tm | tk (both power-of-two multiples of 128), so npad divides both.
    npad = _round_up(n, max(tm, tk))
    return npad, tm, tk


def _vmem_budget_bytes():
    """Per-generation VMEM budget with headroom (v7x has only 64 MiB/TC)."""
    cap = 64 * 1024 * 1024
    try:
        cap = int(pltpu.get_tpu_info().vmem_capacity_bytes)
    except Exception:
        pass
    return min(cap * 3 // 4, 96 * 1024 * 1024)


# --------------------------------------------------------------------------
# Kernel 1: tiny projection  P = M @ W   (row-tiled, no K reduction needed
# for the small feature widths; runs once per layer's input).
# --------------------------------------------------------------------------
def _project_kernel(m_ref, w_ref, o_ref):
    o_ref[...] = jnp.dot(m_ref[...].astype(jnp.float32), w_ref[...],
                         preferred_element_type=jnp.float32).astype(o_ref.dtype)


def _project_call(m_p, w_p, *, tm, out_dtype, vmem_limit):
    npad, kdim = m_p.shape
    odim = w_p.shape[1]
    cost = pl.CostEstimate(
        flops=2 * npad * kdim * odim,
        transcendentals=0,
        bytes_accessed=(m_p.size * m_p.dtype.itemsize
                        + w_p.size * w_p.dtype.itemsize
                        + npad * odim * jnp.dtype(out_dtype).itemsize),
    )
    return pl.pallas_call(
        _project_kernel,
        out_shape=jax.ShapeDtypeStruct((npad, odim), out_dtype),
        grid=(npad // tm,),
        in_specs=[
            pl.BlockSpec((tm, kdim), lambda i: (i, 0)),
            pl.BlockSpec((kdim, odim), lambda i: (0, 0)),
        ],
        out_specs=pl.BlockSpec((tm, odim), lambda i: (i, 0)),
        compiler_params=pltpu.CompilerParams(
            dimension_semantics=("parallel",),
            vmem_limit_bytes=vmem_limit,
        ),
        cost_estimate=cost,
    )(m_p, w_p)


# --------------------------------------------------------------------------
# Kernel 2: aggregation  act(A_hat @ M + b) [@ W_next]
#   grid = (row tiles [parallel], K tiles [arbitrary]); f32 VMEM accumulator
#   (P1 + P3).  M is either VMEM-resident (full-extent block, sliced in the
#   kernel) or streamed per K tile.
# --------------------------------------------------------------------------
def _agg_kernel(*refs, tk, m_resident, activation, has_proj):
    if has_proj:
        a_ref, m_ref, b_ref, w_ref, o_ref, acc_ref = refs
    else:
        a_ref, m_ref, b_ref, o_ref, acc_ref = refs
        w_ref = None

    k = pl.program_id(1)

    @pl.when(k == 0)
    def _():
        acc_ref[...] = jnp.zeros_like(acc_ref)

    if m_resident:
        off = pl.multiple_of(k * tk, tk)
        m_blk = m_ref[pl.ds(off, tk), :]
    else:
        m_blk = m_ref[...]

    # bf16 x bf16 -> f32 accumulation on the MXU.
    acc_ref[...] += jnp.dot(a_ref[...], m_blk,
                            preferred_element_type=jnp.float32)

    @pl.when(k == pl.num_programs(1) - 1)
    def _():
        y = acc_ref[...] + b_ref[...]
        if activation == "relu":
            y = jnp.maximum(y, 0.0)
        else:  # "sigmoid"
            y = jax.nn.sigmoid(y)
        if has_proj:
            # Fuse the next layer's tiny projection: write H @ W_next directly.
            y = jnp.dot(y, w_ref[...], preferred_element_type=jnp.float32)
        o_ref[...] = y.astype(o_ref.dtype)


def _agg_call(a_p, m_p, b_p, w_p, *, activation, out_dtype, tm, tk,
              vmem_limit, m_resident):
    npad = a_p.shape[0]
    fdim = m_p.shape[1]
    has_proj = w_p is not None
    odim = w_p.shape[1] if has_proj else fdim
    bias_w = b_p.shape[1]

    kernel = functools.partial(_agg_kernel, tk=tk, m_resident=m_resident,
                               activation=activation, has_proj=has_proj)

    if m_resident:
        # Full-extent block, constant index -> fetched into VMEM exactly once.
        m_spec = pl.BlockSpec((npad, fdim), lambda i, k: (0, 0))
        m_reads = 1
    else:
        m_spec = pl.BlockSpec((tk, fdim), lambda i, k: (k, 0))
        m_reads = npad // tm  # re-streamed once per row tile

    in_specs = [
        pl.BlockSpec((tm, tk), lambda i, k: (i, k)),       # A_hat tile
        m_spec,                                            # XW / HW operand
        pl.BlockSpec((1, bias_w), lambda i, k: (0, 0)),    # bias (resident)
    ]
    args = [a_p, m_p, b_p]
    if has_proj:
        in_specs.append(pl.BlockSpec((fdim, odim), lambda i, k: (0, 0)))
        args.append(w_p)

    flops = 2 * npad * npad * fdim + (2 * npad * fdim * odim if has_proj else 0)
    transc = npad * odim if activation == "sigmoid" else 0
    bytes_acc = (a_p.size * a_p.dtype.itemsize
                 + m_reads * m_p.size * m_p.dtype.itemsize
                 + b_p.size * b_p.dtype.itemsize
                 + (w_p.size * w_p.dtype.itemsize if has_proj else 0)
                 + npad * odim * jnp.dtype(out_dtype).itemsize)

    return pl.pallas_call(
        kernel,
        out_shape=jax.ShapeDtypeStruct((npad, odim), out_dtype),
        grid=(npad // tm, npad // tk),
        in_specs=in_specs,
        out_specs=pl.BlockSpec((tm, odim), lambda i, k: (i, 0)),
        scratch_shapes=[pltpu.VMEM((tm, fdim), jnp.float32)],
        compiler_params=pltpu.CompilerParams(
            dimension_semantics=("parallel", "arbitrary"),
            vmem_limit_bytes=vmem_limit,
        ),
        cost_estimate=pl.CostEstimate(flops=flops, transcendentals=transc,
                                      bytes_accessed=bytes_acc),
    )(*args)


# --------------------------------------------------------------------------
# Forward: project -> aggregate(+fused next projection) -> aggregate.
# --------------------------------------------------------------------------
@functools.partial(jax.jit, static_argnames=("tm", "tk"))
def gcn_forward(a_p, x, w1, b1, w2, b2, *, tm, tk):
    n, f_in = x.shape
    hidden = w1.shape[1]
    out_dim = w2.shape[1]
    npad = a_p.shape[0]

    fp = _round_up(f_in, LANE)
    hp = _round_up(hidden, LANE)
    op = _round_up(out_dim, LANE)

    vmem_limit = _vmem_budget_bytes()

    # Pad small operands (A_hat is pre-padded / pre-cast outside this jit).
    x_p = jnp.zeros((npad, fp), jnp.bfloat16).at[:n, :f_in].set(
        x.astype(jnp.bfloat16))
    w1_p = jnp.zeros((fp, hp), jnp.float32).at[:f_in, :hidden].set(w1)
    b1_p = jnp.zeros((1, hp), jnp.float32).at[:, :hidden].set(b1.reshape(1, -1))
    w2_p = jnp.zeros((hp, op), jnp.float32).at[:hidden, :out_dim].set(w2)
    b2_p = jnp.zeros((1, op), jnp.float32).at[:, :out_dim].set(b2.reshape(1, -1))

    # Keep the aggregated operand VMEM-resident when it fits the budget.
    res1 = (npad * hp * 2) <= vmem_limit // 4
    res2 = (npad * op * 2) <= vmem_limit // 4

    # 1) XW1 = X @ W1  (project before aggregating)
    xw1 = _project_call(x_p, w1_p, tm=tm, out_dtype=jnp.bfloat16,
                        vmem_limit=vmem_limit)
    # 2) HW2 = relu(A_hat @ XW1 + b1) @ W2   (layer-1 agg + fused projection)
    hw2 = _agg_call(a_p, xw1, b1_p, w2_p, activation="relu",
                    out_dtype=jnp.bfloat16, tm=tm, tk=tk,
                    vmem_limit=vmem_limit, m_resident=res1)
    # 3) Y = sigmoid(A_hat @ HW2 + b2)       (layer-2 agg)
    y_p = _agg_call(a_p, hw2, b2_p, None, activation="sigmoid",
                    out_dtype=jnp.float32, tm=tm, tk=tk,
                    vmem_limit=vmem_limit, m_resident=res2)
    return y_p[:n, :out_dim]


def build_normalized_adjacency(edge_index, num_nodes, npad):
    """Dense A_hat = D^-1/2 (A + I) D^-1/2 from COO edge_index.

    Returns (a_hat_f32, a_hat_padded_bf16).  The pad + bf16 cast of the
    largest array is done once here (hoisted out of the per-forward path).
    Note: assumes edge_index has no pre-existing self loops / duplicates.
    """
    src, dst = edge_index[0], edge_index[1]
    a = jnp.zeros((num_nodes, num_nodes), jnp.float32)
    # GCNConv aggregates messages from source j into target i for edge (j -> i).
    a = a.at[dst, src].add(1.0)
    a = a + jnp.eye(num_nodes, dtype=jnp.float32)  # self loops
    deg = jnp.sum(a, axis=1)
    d_inv_sqrt = jnp.where(deg > 0, 1.0 / jnp.sqrt(deg), 0.0)
    a_hat = d_inv_sqrt[:, None] * a * d_inv_sqrt[None, :]
    a_p = jnp.zeros((npad, npad), jnp.bfloat16).at[:num_nodes, :num_nodes].set(
        a_hat.astype(jnp.bfloat16))
    return a_hat, a_p


if __name__ == "__main__":
    key = jax.random.PRNGKey(0)

    # Small synthetic sizes consistent with the module's forward.
    num_nodes = 8
    input_dim = 16
    hidden_dim = 32
    output_dim = 8

    k_x, k_w1, k_b1, k_w2, k_b2 = jax.random.split(key, 5)

    x = jax.random.normal(k_x, (num_nodes, input_dim), dtype=jnp.float32)

    # Deterministic graph: bidirectional ring over the N nodes.
    src = jnp.arange(num_nodes, dtype=jnp.int32)
    dst = (src + 1) % num_nodes
    edge_index = jnp.stack(
        [jnp.concatenate([src, dst]), jnp.concatenate([dst, src])], axis=0
    )

    npad, tm, tk = _tile_plan(num_nodes)
    a_hat, a_p = build_normalized_adjacency(edge_index, num_nodes, npad)

    # GCNConv weights (Glorot-style scale), small nonzero biases.
    w1 = jax.random.normal(k_w1, (input_dim, hidden_dim), dtype=jnp.float32) * (
        (2.0 / (input_dim + hidden_dim)) ** 0.5
    )
    b1 = jax.random.normal(k_b1, (1, hidden_dim), dtype=jnp.float32) * 0.1
    w2 = jax.random.normal(k_w2, (hidden_dim, output_dim), dtype=jnp.float32) * (
        (2.0 / (hidden_dim + output_dim)) ** 0.5
    )
    b2 = jax.random.normal(k_b2, (1, output_dim), dtype=jnp.float32) * 0.1

    out = gcn_forward(a_p, x, w1, b1, w2, b2, tm=tm, tk=tk)
    jax.block_until_ready(out)

    # Sanity check against a pure-JAX f32 reference (kernel streams bf16).
    ref_h = jnp.maximum(a_hat @ (x @ w1) + b1, 0.0)
    ref = jax.nn.sigmoid(a_hat @ (ref_h @ w2) + b2)
    assert out.shape == (num_nodes, output_dim)
    assert jnp.allclose(out, ref, atol=2e-2, rtol=2e-2), "mismatch vs reference"

    print("KERNEL_OK")
</pallas_src>

<mosaic_0001>
module attributes {stable_mosaic.version = 11 : i64} {
  func.func @_project_kernel(%arg0: i32, %arg1: memref<128x128xbf16, #tpu.memory_space<vmem>>, %arg2: memref<128x128xf32, #tpu.memory_space<vmem>>, %arg3: memref<128x128xbf16, #tpu.memory_space<vmem>>) attributes {dimension_semantics = [#tpu.dimension_semantics<parallel>], iteration_bounds = array<i64: 1>, scalar_prefetch = 0 : i64, scratch_operands = 0 : i64, tpu.core_type = #tpu.core_type<tc>, window_params = [{transform_indices = @transform_0, window_bounds = array<i64: 128, 128>}, {pipeline_mode = #tpu.pipeline_mode<synchronous>, transform_indices = @transform_1, window_bounds = array<i64: 128, 128>}, {transform_indices = @transform_2, window_bounds = array<i64: 128, 128>}]} {
    %c0 = arith.constant 0 : index
    %c0_0 = arith.constant 0 : index
    %0 = vector.load %arg1[%c0, %c0_0] : memref<128x128xbf16, #tpu.memory_space<vmem>>, vector<128x128xbf16>
    %1 = arith.extf %0 : vector<128x128xbf16> to vector<128x128xf32>
    %c0_1 = arith.constant 0 : index
    %c0_2 = arith.constant 0 : index
    %2 = vector.load %arg2[%c0_1, %c0_2] : memref<128x128xf32, #tpu.memory_space<vmem>>, vector<128x128xf32>
    %cst = arith.constant dense<0.000000e+00> : vector<128x128xf32>
    %3 = tpu.matmul %1, %2, %cst {dimension_numbers = #tpu.dot_dimension_numbers<[1], [0], [0], [1], [0, 0, 1, 1], [], []>} : vector<128x128xf32>, vector<128x128xf32>, vector<128x128xf32> -> vector<128x128xf32>
    %4 = arith.truncf %3 : vector<128x128xf32> to vector<128x128xbf16>
    %c0_3 = arith.constant 0 : index
    %c0_4 = arith.constant 0 : index
    %5 = vector.load %arg3[%c0_3, %c0_4] : memref<128x128xbf16, #tpu.memory_space<vmem>>, vector<128x128xbf16>
    tpu.vector_store %arg3[%c0_3, %c0_4], %4 {strides = array<i32>} : memref<128x128xbf16, #tpu.memory_space<vmem>>, vector<128x128xbf16>,
    return
  }
  func.func @transform_0(%arg0: i32) -> (i32, i32) {
    %c0_i32 = arith.constant 0 : i32
    %c0_i32_0 = arith.constant 0 : i32
    return %arg0, %c0_i32 : i32, i32
  }
  func.func @transform_1(%arg0: i32) -> (i32, i32) {
    %c0_i32 = arith.constant 0 : i32
    %c0_i32_0 = arith.constant 0 : i32
    %c0_i32_1 = arith.constant 0 : i32
    return %c0_i32, %c0_i32_0 : i32, i32
  }
  func.func @transform_2(%arg0: i32) -> (i32, i32) {
    %c0_i32 = arith.constant 0 : i32
    %c0_i32_0 = arith.constant 0 : i32
    return %arg0, %c0_i32 : i32, i32
  }
}

module attributes {stable_mosaic.version = 11 : i64} {
  func.func @_agg_kernel(%arg0: i32, %arg1: i32, %arg2: memref<128x128xbf16, #tpu.memory_space<vmem>>, %arg3: memref<128x128xbf16, #tpu.memory_space<vmem>>, %arg4: memref<1x128xf32, #tpu.memory_space<vmem>>, %arg5: memref<128x128xf32, #tpu.memory_space<vmem>>, %arg6: memref<128x128xbf16, #tpu.memory_space<vmem>>, %arg7: memref<128x128xf32, #tpu.memory_space<vmem>>) attributes {dimension_semantics = [#tpu.dimension_semantics<parallel>, #tpu.dimension_semantics<arbitrary>], iteration_bounds = array<i64: 1, 1>, scalar_prefetch = 0 : i64, scratch_operands = 1 : i64, tpu.core_type = #tpu.core_type<tc>, window_params = [{transform_indices = @transform_0, window_bounds = array<i64: 128, 128>}, {pipeline_mode = #tpu.pipeline_mode<synchronous>, transform_indices = @transform_1, window_bounds = array<i64: 128, 128>}, {pipeline_mode = #tpu.pipeline_mode<synchronous>, transform_indices = @transform_2, window_bounds = array<i64: 1, 128>}, {pipeline_mode = #tpu.pipeline_mode<synchronous>, transform_indices = @transform_3, window_bounds = array<i64: 128, 128>}, {transform_indices = @transform_4, window_bounds = array<i64: 128, 128>}]} {
    %c0_i32 = arith.constant 0 : i32
    %0 = arith.cmpi eq, %arg1, %c0_i32 : i32
    %1 = arith.extui %0 : i1 to i32
    %c0_i32_0 = arith.constant 0 : i32
    %2 = arith.cmpi ne, %1, %c0_i32_0 : i32
    scf.if %2 {
      %cst_9 = arith.constant 0.000000e+00 : f32
      %15 = vector.broadcast %cst_9 : f32 to vector<128x128xf32>
      %c0_10 = arith.constant 0 : index
      %c0_11 = arith.constant 0 : index
      %16 = vector.load %arg7[%c0_10, %c0_11] : memref<128x128xf32, #tpu.memory_space<vmem>>, vector<128x128xf32>
      tpu.vector_store %arg7[%c0_10, %c0_11], %15 {strides = array<i32>} : memref<128x128xf32, #tpu.memory_space<vmem>>, vector<128x128xf32>,
    } else {
    }
    %c128_i32 = arith.constant 128 : i32
    %3 = arith.muli %arg1, %c128_i32 : i32
    %4 = tpu.assume_multiple %3, 128 : i32
    %5 = arith.index_cast %4 : i32 to index
    %c0 = arith.constant 0 : index
    %6 = vector.load %arg3[%5, %c0] : memref<128x128xbf16, #tpu.memory_space<vmem>>, vector<128x128xbf16>
    %c0_1 = arith.constant 0 : index
    %c0_2 = arith.constant 0 : index
    %7 = vector.load %arg7[%c0_1, %c0_2] : memref<128x128xf32, #tpu.memory_space<vmem>>, vector<128x128xf32>
    %c0_3 = arith.constant 0 : index
    %c0_4 = arith.constant 0 : index
    %8 = vector.load %arg2[%c0_3, %c0_4] : memref<128x128xbf16, #tpu.memory_space<vmem>>, vector<128x128xbf16>
    %cst = arith.constant dense<0.000000e+00> : vector<128x128xf32>
    %9 = tpu.matmul %8, %6, %cst {dimension_numbers = #tpu.dot_dimension_numbers<[1], [0], [0], [1], [0, 0, 1, 1], [], []>} : vector<128x128xbf16>, vector<128x128xbf16>, vector<128x128xf32> -> vector<128x128xf32>
    %10 = arith.addf %7, %9 : vector<128x128xf32>
    %c0_5 = arith.constant 0 : index
    %c0_6 = arith.constant 0 : index
    %11 = vector.load %arg7[%c0_5, %c0_6] : memref<128x128xf32, #tpu.memory_space<vmem>>, vector<128x128xf32>
    tpu.vector_store %arg7[%c0_5, %c0_6], %10 {strides = array<i32>} : memref<128x128xf32, #tpu.memory_space<vmem>>, vector<128x128xf32>,
    %c0_i32_7 = arith.constant 0 : i32
    %12 = arith.cmpi eq, %arg1, %c0_i32_7 : i32
    %13 = arith.extui %12 : i1 to i32
    %c0_i32_8 = arith.constant 0 : i32
    %14 = arith.cmpi ne, %13, %c0_i32_8 : i32
    scf.if %14 {
      %c0_9 = arith.constant 0 : index
      %c0_10 = arith.constant 0 : index
      %15 = vector.load %arg7[%c0_9, %c0_10] : memref<128x128xf32, #tpu.memory_space<vmem>>, vector<128x128xf32>
      %c0_11 = arith.constant 0 : index
      %c0_12 = arith.constant 0 : index
      %16 = vector.load %arg4[%c0_11, %c0_12] : memref<1x128xf32, #tpu.memory_space<vmem>>, vector<1x128xf32>
      %17 = vector.broadcast %16 : vector<1x128xf32> to vector<128x128xf32>
      %18 = arith.addf %15, %17 : vector<128x128xf32>
      %cst_13 = arith.constant 0.000000e+00 : f32
      %19 = vector.broadcast %cst_13 : f32 to vector<128x128xf32>
      %20 = arith.maximumf %18, %19 : vector<128x128xf32>
      %c0_14 = arith.constant 0 : index
      %c0_15 = arith.constant 0 : index
      %21 = vector.load %arg5[%c0_14, %c0_15] : memref<128x128xf32, #tpu.memory_space<vmem>>, vector<128x128xf32>
      %cst_16 = arith.constant dense<0.000000e+00> : vector<128x128xf32>
      %22 = tpu.matmul %20, %21, %cst_16 {dimension_numbers = #tpu.dot_dimension_numbers<[1], [0], [0], [1], [0, 0, 1, 1], [], []>} : vector<128x128xf32>, vector<128x128xf32>, vector<128x128xf32> -> vector<128x128xf32>
      %23 = arith.truncf %22 : vector<128x128xf32> to vector<128x128xbf16>
      %c0_17 = arith.constant 0 : index
      %c0_18 = arith.constant 0 : index
      %24 = vector.load %arg6[%c0_17, %c0_18] : memref<128x128xbf16, #tpu.memory_space<vmem>>, vector<128x128xbf16>
      tpu.vector_store %arg6[%c0_17, %c0_18], %23 {strides = array<i32>} : memref<128x128xbf16, #tpu.memory_space<vmem>>, vector<128x128xbf16>,
    } else {
    }
    return
  }
  func.func @transform_0(%arg0: i32, %arg1: i32) -> (i32, i32) {
    %c0_i32 = arith.constant 0 : i32
    return %arg0, %arg1 : i32, i32
  }
  func.func @transform_1(%arg0: i32, %arg1: i32) -> (i32, i32) {
    %c0_i32 = arith.constant 0 : i32
    %c0_i32_0 = arith.constant 0 : i32
    %c0_i32_1 = arith.constant 0 : i32
    return %c0_i32, %c0_i32_0 : i32, i32
  }
  func.func @transform_2(%arg0: i32, %arg1: i32) -> (i32, i32) {
    %c0_i32 = arith.constant 0 : i32
    %c0_i32_0 = arith.constant 0 : i32
    %c0_i32_1 = arith.constant 0 : i32
    return %c0_i32, %c0_i32_0 : i32, i32
  }
  func.func @transform_3(%arg0: i32, %arg1: i32) -> (i32, i32) {
    %c0_i32 = arith.constant 0 : i32
    %c0_i32_0 = arith.constant 0 : i32
    %c0_i32_1 = arith.constant 0 : i32
    return %c0_i32, %c0_i32_0 : i32, i32
  }
  func.func @transform_4(%arg0: i32, %arg1: i32) -> (i32, i32) {
    %c0_i32 = arith.constant 0 : i32
    %c0_i32_0 = arith.constant 0 : i32
    return %arg0, %c0_i32 : i32, i32
  }
}

module attributes {stable_mosaic.version = 11 : i64} {
  func.func @_agg_kernel(%arg0: i32, %arg1: i32, %arg2: memref<128x128xbf16, #tpu.memory_space<vmem>>, %arg3: memref<128x128xbf16, #tpu.memory_space<vmem>>, %arg4: memref<1x128xf32, #tpu.memory_space<vmem>>, %arg5: memref<128x128xf32, #tpu.memory_space<vmem>>, %arg6: memref<128x128xf32, #tpu.memory_space<vmem>>) attributes {dimension_semantics = [#tpu.dimension_semantics<parallel>, #tpu.dimension_semantics<arbitrary>], iteration_bounds = array<i64: 1, 1>, scalar_prefetch = 0 : i64, scratch_operands = 1 : i64, tpu.core_type = #tpu.core_type<tc>, window_params = [{transform_indices = @transform_0, window_bounds = array<i64: 128, 128>}, {pipeline_mode = #tpu.pipeline_mode<synchronous>, transform_indices = @transform_1, window_bounds = array<i64: 128, 128>}, {pipeline_mode = #tpu.pipeline_mode<synchronous>, transform_indices = @transform_2, window_bounds = array<i64: 1, 128>}, {transform_indices = @transform_3, window_bounds = array<i64: 128, 128>}]} {
    %c0_i32 = arith.constant 0 : i32
    %0 = arith.cmpi eq, %arg1, %c0_i32 : i32
    %1 = arith.extui %0 : i1 to i32
    %c0_i32_0 = arith.constant 0 : i32
    %2 = arith.cmpi ne, %1, %c0_i32_0 : i32
    scf.if %2 {
      %cst_9 = arith.constant 0.000000e+00 : f32
      %15 = vector.broadcast %cst_9 : f32 to vector<128x128xf32>
      %c0_10 = arith.constant 0 : index
      %c0_11 = arith.constant 0 : index
      %16 = vector.load %arg6[%c0_10, %c0_11] : memref<128x128xf32, #tpu.memory_space<vmem>>, vector<128x128xf32>
      tpu.vector_store %arg6[%c0_10, %c0_11], %15 {strides = array<i32>} : memref<128x128xf32, #tpu.memory_space<vmem>>, vector<128x128xf32>,
    } else {
    }
    %c128_i32 = arith.constant 128 : i32
    %3 = arith.muli %arg1, %c128_i32 : i32
    %4 = tpu.assume_multiple %3, 128 : i32
    %5 = arith.index_cast %4 : i32 to index
    %c0 = arith.constant 0 : index
    %6 = vector.load %arg3[%5, %c0] : memref<128x128xbf16, #tpu.memory_space<vmem>>, vector<128x128xbf16>
    %c0_1 = arith.constant 0 : index
    %c0_2 = arith.constant 0 : index
    %7 = vector.load %arg6[%c0_1, %c0_2] : memref<128x128xf32, #tpu.memory_space<vmem>>, vector<128x128xf32>
    %c0_3 = arith.constant 0 : index
    %c0_4 = arith.constant 0 : index
    %8 = vector.load %arg2[%c0_3, %c0_4] : memref<128x128xbf16, #tpu.memory_space<vmem>>, vector<128x128xbf16>
    %cst = arith.constant dense<0.000000e+00> : vector<128x128xf32>
    %9 = tpu.matmul %8, %6, %cst {dimension_numbers = #tpu.dot_dimension_numbers<[1], [0], [0], [1], [0, 0, 1, 1], [], []>} : vector<128x128xbf16>, vector<128x128xbf16>, vector<128x128xf32> -> vector<128x128xf32>
    %10 = arith.addf %7, %9 : vector<128x128xf32>
    %c0_5 = arith.constant 0 : index
    %c0_6 = arith.constant 0 : index
    %11 = vector.load %arg6[%c0_5, %c0_6] : memref<128x128xf32, #tpu.memory_space<vmem>>, vector<128x128xf32>
    tpu.vector_store %arg6[%c0_5, %c0_6], %10 {strides = array<i32>} : memref<128x128xf32, #tpu.memory_space<vmem>>, vector<128x128xf32>,
    %c0_i32_7 = arith.constant 0 : i32
    %12 = arith.cmpi eq, %arg1, %c0_i32_7 : i32
    %13 = arith.extui %12 : i1 to i32
    %c0_i32_8 = arith.constant 0 : i32
    %14 = arith.cmpi ne, %13, %c0_i32_8 : i32
    scf.if %14 {
      %c0_9 = arith.constant 0 : index
      %c0_10 = arith.constant 0 : index
      %15 = vector.load %arg6[%c0_9, %c0_10] : memref<128x128xf32, #tpu.memory_space<vmem>>, vector<128x128xf32>
      %c0_11 = arith.constant 0 : index
      %c0_12 = arith.constant 0 : index
      %16 = vector.load %arg4[%c0_11, %c0_12] : memref<1x128xf32, #tpu.memory_space<vmem>>, vector<1x128xf32>
      %17 = vector.broadcast %16 : vector<1x128xf32> to vector<128x128xf32>
      %18 = arith.addf %15, %17 : vector<128x128xf32>
      %19 = arith.negf %18 : vector<128x128xf32>
      %20 = math.exp %19 : vector<128x128xf32>
      %cst_13 = arith.constant 1.000000e+00 : f32
      %21 = vector.broadcast %cst_13 : f32 to vector<128x128xf32>
      %22 = arith.addf %21, %20 : vector<128x128xf32>
      %23 = arith.divf %21, %22 : vector<128x128xf32>
      %c0_14 = arith.constant 0 : index
      %c0_15 = arith.constant 0 : index
      %24 = vector.load %arg5[%c0_14, %c0_15] : memref<128x128xf32, #tpu.memory_space<vmem>>, vector<128x128xf32>
      tpu.vector_store %arg5[%c0_14, %c0_15], %23 {strides = array<i32>} : memref<128x128xf32, #tpu.memory_space<vmem>>, vector<128x128xf32>,
    } else {
    }
    return
  }
  func.func @transform_0(%arg0: i32, %arg1: i32) -> (i32, i32) {
    %c0_i32 = arith.constant 0 : i32
    return %arg0, %arg1 : i32, i32
  }
  func.func @transform_1(%arg0: i32, %arg1: i32) -> (i32, i32) {
    %c0_i32 = arith.constant 0 : i32
    %c0_i32_0 = arith.constant 0 : i32
    %c0_i32_1 = arith.constant 0 : i32
    return %c0_i32, %c0_i32_0 : i32, i32
  }
  func.func @transform_2(%arg0: i32, %arg1: i32) -> (i32, i32) {
    %c0_i32 = arith.constant 0 : i32
    %c0_i32_0 = arith.constant 0 : i32
    %c0_i32_1 = arith.constant 0 : i32
    return %c0_i32, %c0_i32_0 : i32, i32
  }
  func.func @transform_3(%arg0: i32, %arg1: i32) -> (i32, i32) {
    %c0_i32 = arith.constant 0 : i32
    %c0_i32_0 = arith.constant 0 : i32
    return %arg0, %c0_i32 : i32, i32
  }
}

</mosaic_0001>

<bundles_post_ra>
// kernel: gcn_forward.3
= control target key start
LH: loop header
LB: loop body
LE: loop exit
PB: predicated region body
PF: predicated region fallthrough
CT: control target
= control target key end

     0   :  { %s653_s1 = inlined_call_operand.vmem [shape: f32[128,128], index: 1, kind: input, shape index: {}]   ;;  %s654_s0 = inlined_call_operand.vmem [shape: bf16[128,128], index: 0, kind: input, shape index: {}]   ;;  %s655_s2 = inlined_call_operand.vmem [shape: bf16[128,128], index: 2, kind: output, shape index: {}]  }
   0x1   :  { %v43_v0 = vld [vmem:[%s653_s1] sm:$0xff]  ;;  %v44_v1 = vld [vmem:[%s653_s1 + $0x8] sm:$0xff]  ;;  %v45_v2 = vld [vmem:[%s653_s1 + $0x10] sm:$0xff] }
   0x2   :  { %v494_v3 = vpack.c.bf16 %v44_v1, %v43_v0  ;;  %v46_v4 = vld [vmem:[%s653_s1 + $0x18] sm:$0xff]  ;;  %v47_v6 = vld [vmem:[%s653_s1 + $0x20] sm:$0xff]  ;;  %v48_v7 = vld [vmem:[%s653_s1 + $0x28] sm:$0xff] }
   0x3   :  { %v498_v5 = vpack.c.bf16 %v46_v4, %v45_v2  ;;  %v502_v8 = vpack.c.bf16 %v48_v7, %v47_v6  ;;  %v321_v9 = vld [vmem:[%s654_s0] sm:$0xff]   ;;  %v49_v11 = vld [vmem:[%s653_s1 + $0x30] sm:$0xff]  ;;  %v50_v12 = vld [vmem:[%s653_s1 + $0x38] sm:$0xff] }
   0x4   :  { %495 = vmatprep.subr.bf16.mxu0 %v494_v3  ;;  %526 = vmatprep.subr.bf16.mxu1 %v494_v3  ;;  %v395_v10 = vld [vmem:[%s654_s0 + $0x20] sm:$0xff]   ;;  %v322_v13 = vunpack.c.l.bf16 %v321_v9  ;;  %v506_v15 = vpack.c.bf16 %v50_v12, %v49_v11  ;;  %v52_v17 = vld [vmem:[%s653_s1 + $0x48] sm:$0xff]  ;;  %v53_v19 = vld [vmem:[%s653_s1 + $0x50] sm:$0xff]  ;;  %v323_v30 = vunpack.c.h.bf16 %v321_v9 }
   0x5   :  { %497 = vmatpush3.bf16.msra.mxu0 %v494_v3  ;;  %534 = vmatpush3.bf16.msra.mxu1 %v494_v3  ;;  %v338_v14 = vunpack.c.l.bf16 %v395_v10  ;;  %v51_v16 = vld [vmem:[%s653_s1 + $0x40] sm:$0xff]  ;;  %v54_v20 = vld [vmem:[%s653_s1 + $0x58] sm:$0xff]  ;;  %v56_v23 = vld [vmem:[%s653_s1 + $0x68] sm:$0xff]  ;;  %v339_v31 = vunpack.c.h.bf16 %v395_v10 }
   0x6   :  { %499 = vmatprep.subr.bf16.mxu0 %v498_v5  ;;  %527 = vmatprep.subr.bf16.mxu1 %v498_v5  ;;  %v510_v18 = vpack.c.bf16 %v52_v17, %v51_v16  ;;  %v514_v21 = vpack.c.bf16 %v54_v20, %v53_v19  ;;  %v55_v22 = vld [vmem:[%s653_s1 + $0x60] sm:$0xff]  ;;  %v57_v25 = vld [vmem:[%s653_s1 + $0x70] sm:$0xff]  ;;  %v58_v26 = vld [vmem:[%s653_s1 + $0x78] sm:$0xff] }
   0x7   :  { %470 = vmatprep.mubr.f32.mxu0 %v322_v13  ;;  %482 = vmatprep.mubr.f32.mxu1 %v338_v14  ;;  %v518_v24 = vpack.c.bf16 %v56_v23, %v55_v22  ;;  %v522_v27 = vpack.c.bf16 %v58_v26, %v57_v25  ;;  %v392_v28 = vld [vmem:[%s654_s0 + $0x8] sm:$0xff]   ;;  %v393_v34 = vld [vmem:[%s654_s0 + $0x10] sm:$0xff]   ;;  %v394_v40 = vld [vmem:[%s654_s0 + $0x18] sm:$0xff]  }
   0x8   :  { %v396_v29 = vld [vmem:[%s654_s0 + $0x28] sm:$0xff]   ;;  %v326_v32 = vunpack.c.l.bf16 %v392_v28  ;;  %v397_v35 = vld [vmem:[%s654_s0 + $0x30] sm:$0xff]   ;;  %v327_v36 = vunpack.c.h.bf16 %v392_v28  ;;  %v330_v38 = vunpack.c.l.bf16 %v393_v34  ;;  %v398_v41 = vld [vmem:[%s654_s0 + $0x38] sm:$0xff]   ;;  %v331_v42 = vunpack.c.h.bf16 %v393_v34 }
   0x9   :  { %501 = vmatpush3.bf16.msra.mxu0 %v498_v5  ;;  %535 = vmatpush3.bf16.msra.mxu1 %v498_v5  ;;  %v342_v33 = vunpack.c.l.bf16 %v396_v29  ;;  %v343_v37 = vunpack.c.h.bf16 %v396_v29  ;;  %v346_v39 = vunpack.c.l.bf16 %v397_v35  ;;  %v347_v43 = vunpack.c.h.bf16 %v397_v35 }
   0xa   :  { %503 = vmatprep.subr.bf16.mxu0 %v502_v8  ;;  %528 = vmatprep.subr.bf16.mxu1 %v502_v8  ;;  %v334_v44 = vunpack.c.l.bf16 %v394_v40  ;;  %v350_v45 = vunpack.c.l.bf16 %v398_v41  ;;  %v335_v46 = vunpack.c.h.bf16 %v394_v40  ;;  %v351_v47 = vunpack.c.h.bf16 %v398_v41 }
   0xd   :  { %505 = vmatpush3.bf16.msra.mxu0 %v502_v8  ;;  %536 = vmatpush3.bf16.msra.mxu1 %v502_v8 }
   0xe   :  { %507 = vmatprep.subr.bf16.mxu0 %v506_v15  ;;  %529 = vmatprep.subr.bf16.mxu1 %v506_v15 }
  0x11   :  { %509 = vmatpush3.bf16.msra.mxu0 %v506_v15  ;;  %537 = vmatpush3.bf16.msra.mxu1 %v506_v15 }
  0x12   :  { %511 = vmatprep.subr.bf16.mxu0 %v510_v18  ;;  %530 = vmatprep.subr.bf16.mxu1 %v510_v18 }
  0x15   :  { %513 = vmatpush3.bf16.msra.mxu0 %v510_v18  ;;  %538 = vmatpush3.bf16.msra.mxu1 %v510_v18 }
  0x16   :  { %515 = vmatprep.subr.bf16.mxu0 %v514_v21  ;;  %531 = vmatprep.subr.bf16.mxu1 %v514_v21 }
  0x19   :  { %517 = vmatpush3.bf16.msra.mxu0 %v514_v21  ;;  %539 = vmatpush3.bf16.msra.mxu1 %v514_v21 }
  0x1a   :  { %519 = vmatprep.subr.bf16.mxu0 %v518_v24  ;;  %532 = vmatprep.subr.bf16.mxu1 %v518_v24 }
  0x1d   :  { %521 = vmatpush3.bf16.msra.mxu0 %v518_v24  ;;  %540 = vmatpush3.bf16.msra.mxu1 %v518_v24 }
  0x1e   :  { %523 = vmatprep.subr.bf16.mxu0 %v522_v27  ;;  %533 = vmatprep.subr.bf16.mxu1 %v522_v27 }
  0x21   :  { %525 = vmatpush3.bf16.msra.mxu0 %v522_v27  ;;  %541 = vmatpush3.bf16.msra.mxu1 %v522_v27 }
  0x24   :  { %471 = vmatmul.mubr.f32.vlgmr.msra.gmra.mrb[0].mxu0 %v323_v30  ;;  %483 = vmatmul.mubr.f32.vlgmr.msra.gmra.mrb[0].mxu1 %v339_v31 }
  0x25   :  { %473 = vmatprep.mubr.f32.mxu0 %v326_v32  ;;  %485 = vmatprep.mubr.f32.mxu1 %v342_v33 }
  0x28   :  { %474 = vmatmul.mubr.f32.gmra.mrb[2].mxu0 %v327_v36  ;;  %486 = vmatmul.mubr.f32.gmra.mrb[2].mxu1 %v343_v37 }
  0x29   :  { %476 = vmatprep.mubr.f32.mxu0 %v330_v38  ;;  %488 = vmatprep.mubr.f32.mxu1 %v346_v39 }
  0x2c   :  { %477 = vmatmul.mubr.f32.gmra.mrb[4].mxu0 %v331_v42  ;;  %489 = vmatmul.mubr.f32.gmra.mrb[4].mxu1 %v347_v43 }
  0x2d   :  { %479 = vmatprep.mubr.f32.mxu0 %v334_v44  ;;  %491 = vmatprep.mubr.f32.mxu1 %v350_v45 }
  0x30   :  { %480 = vmatmul.mubr.f32.gmra.mrb[6].mxu0 %v335_v46  ;;  %492 = vmatmul.mubr.f32.gmra.mrb[6].mxu1 %v351_v47 }
  0xf7   :  { %v472_v48 = vpop.f32.mrb[0].mxu0  ;;  %v484_v49 = vpop.f32.mrb[0].mxu1 }
  0xf8   :  { %v125_v50 = vpop.f32.mrb[1].mxu0  ;;  %v165_v51 = vpop.f32.mrb[1].mxu1 }
  0xf9   :  { %v355_v52 = vpack.c.bf16 %v472_v48, %v125_v50  ;;  %v375_v53 = vpack.c.bf16 %v484_v49, %v165_v51 }
  0xfb   :  { %356 = vst [vmem:[%s655_s2] sm:$0xff] %v355_v52   ;;  %402 = vst [vmem:[%s655_s2 + $0x20] sm:$0xff] %v375_v53   ;;  %v475_v54 = vpop.f32.mrb[2].mxu0  ;;  %v487_v55 = vpop.f32.mrb[2].mxu1 }
  0xfc   :  { %v135_v56 = vpop.f32.mrb[3].mxu0  ;;  %v175_v57 = vpop.f32.mrb[3].mxu1 }
  0xfd   :  { %v360_v58 = vpack.c.bf16 %v475_v54, %v135_v56  ;;  %v380_v59 = vpack.c.bf16 %v487_v55, %v175_v57 }
  0xff   :  { %399 = vst [vmem:[%s655_s2 + $0x8] sm:$0xff] %v360_v58   ;;  %403 = vst [vmem:[%s655_s2 + $0x28] sm:$0xff] %v380_v59   ;;  %v478_v60 = vpop.f32.mrb[4].mxu0  ;;  %v490_v61 = vpop.f32.mrb[4].mxu1 }
 0x100   :  { %v145_v62 = vpop.f32.mrb[5].mxu0  ;;  %v185_v63 = vpop.f32.mrb[5].mxu1 }
 0x101   :  { %v365_v0 = vpack.c.bf16 %v478_v60, %v145_v62  ;;  %v385_v1 = vpack.c.bf16 %v490_v61, %v185_v63 }
 0x103   :  { %400 = vst [vmem:[%s655_s2 + $0x10] sm:$0xff] %v365_v0   ;;  %404 = vst [vmem:[%s655_s2 + $0x30] sm:$0xff] %v385_v1   ;;  %v481_v2 = vpop.f32.mrb[6].mxu0  ;;  %v493_v3 = vpop.f32.mrb[6].mxu1 }
 0x104   :  { %v155_v4 = vpop.f32.mrb[7].mxu0  ;;  %v195_v5 = vpop.f32.mrb[7].mxu1 }
 0x105   :  { %v370_v6 = vpack.c.bf16 %v481_v2, %v155_v4  ;;  %v390_v7 = vpack.c.bf16 %v493_v3, %v195_v5 }
 0x107   :  { %401 = vst [vmem:[%s655_s2 + $0x18] sm:$0xff] %v370_v6   ;;  %405 = vst [vmem:[%s655_s2 + $0x38] sm:$0xff] %v390_v7  }

// kernel: gcn_forward.5
= control target key start
LH: loop header
LB: loop body
LE: loop exit
PB: predicated region body
PF: predicated region fallthrough
CT: control target
= control target key end

     0   :  { %s787_s1 = inlined_call_operand.vmem [shape: bf16[128,128], index: 1, kind: input, shape index: {}]   ;;  %s788_s0 = inlined_call_operand.vmem [shape: bf16[128,128], index: 0, kind: input, shape index: {}]   ;;  %s789_s2 = inlined_call_operand.vmem [shape: f32[1,128], index: 2, kind: input, shape index: {}]   ;;  %s790_s3 = inlined_call_operand.vmem [shape: f32[128,128], index: 3, kind: output, shape index: {}]  }
   0x1   :  { %v570_v0 = vld [vmem:[%s787_s1] sm:$0xff]   ;;  %v571_v1 = vld [vmem:[%s787_s1 + $0x8] sm:$0xff]   ;;  %v572_v2 = vld [vmem:[%s787_s1 + $0x10] sm:$0xff]  }
   0x2   :  { %522 = vmatprep.subr.bf16.mxu0 %v570_v0  ;;  %554 = vmatprep.subr.bf16.mxu1 %v570_v0  ;;  %v573_v3 = vld [vmem:[%s787_s1 + $0x18] sm:$0xff]   ;;  %v578_v4 = vld [vmem:[%s788_s0] sm:$0xff]   ;;  %v575_v7 = vld [vmem:[%s787_s1 + $0x28] sm:$0xff]  }
   0x3   :  { %523 = vmatpush3.bf16.msra.mxu0 %v570_v0  ;;  %562 = vmatpush3.bf16.msra.mxu1 %v570_v0  ;;  %v579_v5 = vld [vmem:[%s788_s0 + $0x20] sm:$0xff]   ;;  %v576_v8 = vld [vmem:[%s787_s1 + $0x30] sm:$0xff]   ;;  %v577_v9 = vld [vmem:[%s787_s1 + $0x38] sm:$0xff]  }
   0x4   :  { %524 = vmatprep.subr.bf16.mxu0 %v571_v1  ;;  %555 = vmatprep.subr.bf16.mxu1 %v571_v1  ;;  %v574_v6 = vld [vmem:[%s787_s1 + $0x20] sm:$0xff]   ;;  %v580_v10 = vld [vmem:[%s788_s0 + $0x8] sm:$0xff]   ;;  %v582_v12 = vld [vmem:[%s788_s0 + $0x10] sm:$0xff]  }
   0x5   :  { %538 = vmatprep.mubr.bf16.mxu0 %v578_v4  ;;  %546 = vmatprep.mubr.bf16.mxu1 %v579_v5  ;;  %v581_v11 = vld [vmem:[%s788_s0 + $0x28] sm:$0xff]   ;;  %v583_v13 = vld [vmem:[%s788_s0 + $0x30] sm:$0xff]   ;;  %v584_v14 = vld [vmem:[%s788_s0 + $0x18] sm:$0xff]  }
   0x6   :  { %v585_v15 = vld [vmem:[%s788_s0 + $0x38] sm:$0xff]   ;;  %v721_v16 = vld [vmem:[%s789_s2] ss:$0 sm:$0xff] }
   0x7   :  { %525 = vmatpush3.bf16.msra.mxu0 %v571_v1  ;;  %563 = vmatpush3.bf16.msra.mxu1 %v571_v1 }
   0x8   :  { %526 = vmatprep.subr.bf16.mxu0 %v572_v2  ;;  %556 = vmatprep.subr.bf16.mxu1 %v572_v2 }
   0xb   :  { %527 = vmatpush3.bf16.msra.mxu0 %v572_v2  ;;  %564 = vmatpush3.bf16.msra.mxu1 %v572_v2 }
   0xc   :  { %528 = vmatprep.subr.bf16.mxu0 %v573_v3  ;;  %557 = vmatprep.subr.bf16.mxu1 %v573_v3 }
   0xf   :  { %529 = vmatpush3.bf16.msra.mxu0 %v573_v3  ;;  %565 = vmatpush3.bf16.msra.mxu1 %v573_v3 }
  0x10   :  { %530 = vmatprep.subr.bf16.mxu0 %v574_v6  ;;  %558 = vmatprep.subr.bf16.mxu1 %v574_v6 }
  0x13   :  { %531 = vmatpush3.bf16.msra.mxu0 %v574_v6  ;;  %566 = vmatpush3.bf16.msra.mxu1 %v574_v6 }
  0x14   :  { %532 = vmatprep.subr.bf16.mxu0 %v575_v7  ;;  %559 = vmatprep.subr.bf16.mxu1 %v575_v7 }
  0x17   :  { %533 = vmatpush3.bf16.msra.mxu0 %v575_v7  ;;  %567 = vmatpush3.bf16.msra.mxu1 %v575_v7 }
  0x18   :  { %534 = vmatprep.subr.bf16.mxu0 %v576_v8  ;;  %560 = vmatprep.subr.bf16.mxu1 %v576_v8 }
  0x1b   :  { %535 = vmatpush3.bf16.msra.mxu0 %v576_v8  ;;  %568 = vmatpush3.bf16.msra.mxu1 %v576_v8 }
  0x1c   :  { %536 = vmatprep.subr.bf16.mxu0 %v577_v9  ;;  %561 = vmatprep.subr.bf16.mxu1 %v577_v9 }
  0x1f   :  { %537 = vmatpush3.bf16.msra.mxu0 %v577_v9  ;;  %569 = vmatpush3.bf16.msra.mxu1 %v577_v9 }
  0x22   :  { %539 = vmatmul.mubr.bf16.vlgmr.msra.gmra.mrb[0].mxu0 %v580_v10  ;;  %547 = vmatmul.mubr.bf16.vlgmr.msra.gmra.mrb[0].mxu1 %v581_v11 }
  0x23   :  { %542 = vmatprep.mubr.bf16.mxu0 %v582_v12  ;;  %550 = vmatprep.mubr.bf16.mxu1 %v583_v13 }
  0x2a   :  { %543 = vmatmul.mubr.bf16.gmra.mrb[4].mxu0 %v584_v14  ;;  %551 = vmatmul.mubr.bf16.gmra.mrb[4].mxu1 %v585_v15 }
  0xf5   :  { %v540_v17 = vpop.f32.mrb[0].mxu0  ;;  %v548_v18 = vpop.f32.mrb[0].mxu1 }
  0xf6   :  { %v341_v19 = vadd.f32 %v540_v17, %v721_v16  ;;  %v349_v20 = vadd.f32 %v548_v18, %v721_v16  ;;  %v218_v21 = vpop.f32.mrb[1].mxu0  ;;  %v250_v22 = vpop.f32.mrb[1].mxu1 }
  0xf7   :  { %v339_v23 = vadd.f32 %v721_v16, %v218_v21  ;;  %v347_v24 = vadd.f32 %v721_v16, %v250_v22  ;;  %v541_v25 = vpop.f32.mrb[2].mxu0  ;;  %v549_v26 = vpop.f32.mrb[2].mxu1 }
  0xf8   :  { %v492_v27 = vmul.f32 -1.442695, %v341_v19  ;;  %v500_v28 = vmul.f32 -1.442695, %v349_v20  ;;  %v342_v29 = vadd.f32 %v541_v25, %v721_v16  ;;  %v350_v30 = vadd.f32 %v549_v26, %v721_v16  ;;  %v221_v31 = vpop.f32.mrb[3].mxu0  ;;  %v253_v32 = vpop.f32.mrb[3].mxu1 }
  0xf9   :  { %v490_v33 = vmul.f32 -1.442695, %v339_v23  ;;  %v498_v34 = vmul.f32 -1.442695, %v347_v24  ;;  %v340_v35 = vadd.f32 %v721_v16, %v221_v31  ;;  %v348_v36 = vadd.f32 %v721_v16, %v253_v32 }
  0xfa   :  { %586 = vpow2.f32 %v492_v27  ;;  %v493_v37 = vmul.f32 -1.442695, %v342_v29  ;;  %v501_v38 = vmul.f32 -1.442695, %v350_v30 }
  0xfb   :  { %588 = vpow2.f32 %v500_v28  ;;  %v491_v39 = vmul.f32 -1.442695, %v340_v35  ;;  %v499_v40 = vmul.f32 -1.442695, %v348_v36 }
  0xfc   :  { %590 = vpow2.f32 %v490_v33 }
  0xfd   :  { %592 = vpow2.f32 %v498_v34  ;;  %v544_v41 = vpop.f32.mrb[4].mxu0  ;;  %v552_v42 = vpop.f32.mrb[4].mxu1 }
  0xfe   :  { %594 = vpow2.f32 %v493_v37  ;;  %v345_v43 = vadd.f32 %v544_v41, %v721_v16  ;;  %v353_v44 = vadd.f32 %v552_v42, %v721_v16  ;;  %v234_v45 = vpop.f32.mrb[5].mxu0  ;;  %v266_v46 = vpop.f32.mrb[5].mxu1 }
  0xff   :  { %596 = vpow2.f32 %v501_v38  ;;  %v343_v47 = vadd.f32 %v721_v16, %v234_v45  ;;  %v351_v48 = vadd.f32 %v721_v16, %v266_v46  ;;  %v545_v49 = vpop.f32.mrb[6].mxu0  ;;  %v553_v50 = vpop.f32.mrb[6].mxu1 }
 0x100   :  { %598 = vpow2.f32 %v491_v39  ;;  %v496_v51 = vmul.f32 -1.442695, %v345_v43  ;;  %v504_v52 = vmul.f32 -1.442695, %v353_v44  ;;  %v346_v53 = vadd.f32 %v545_v49, %v721_v16  ;;  %v237_v54 = vpop.f32.mrb[7].mxu0  ;;  %v269_v55 = vpop.f32.mrb[7].mxu1 }
 0x101   :  { %600 = vpow2.f32 %v499_v40  ;;  %v494_v56 = vmul.f32 -1.442695, %v343_v47  ;;  %v502_v57 = vmul.f32 -1.442695, %v351_v48  ;;  %v354_v12 = vadd.f32 %v553_v50, %v721_v16 }
 0x102   :  { %602 = vpow2.f32 %v496_v51  ;;  %v497_v58 = vmul.f32 -1.442695, %v346_v53  ;;  %v344_v15 = vadd.f32 %v721_v16, %v237_v54  ;;  %v352_v19 = vadd.f32 %v721_v16, %v269_v55 }
 0x103   :  { %604 = vpow2.f32 %v504_v52  ;;  %v505_v24 = vmul.f32 -1.442695, %v354_v12 }
 0x104   :  { %v587_v59 = vpop.eup %586  ;;  %606 = vpow2.f32 %v494_v56  ;;  %v495_v27 = vmul.f32 -1.442695, %v344_v15  ;;  %v503_v29 = vmul.f32 -1.442695, %v352_v19 }
 0x105   :  { %v589_v60 = vpop.eup %588  ;;  %v405_v61 = vadd.f32 1.0, %v587_v59  ;;  %608 = vpow2.f32 %v502_v57 }
 0x106   :  { %v591_v62 = vpop.eup %590  ;;  %v413_v63 = vadd.f32 1.0, %v589_v60  ;;  %610 = vpow2.f32 %v497_v58 }
 0x107   :  { %v593_v0 = vpop.eup %592  ;;  %612 = vrcp.f32 %v405_v61  ;;  %v403_v1 = vadd.f32 1.0, %v591_v62 }
 0x108   :  { %v595_v2 = vpop.eup %594  ;;  %614 = vrcp.f32 %v413_v63  ;;  %v411_v3 = vadd.f32 1.0, %v593_v0 }
 0x109   :  { %v597_v4 = vpop.eup %596  ;;  %616 = vrcp.f32 %v403_v1  ;;  %v406_v5 = vadd.f32 1.0, %v595_v2 }
 0x10a   :  { %v599_v6 = vpop.eup %598  ;;  %618 = vrcp.f32 %v411_v3  ;;  %v414_v7 = vadd.f32 1.0, %v597_v4 }
 0x10b   :  { %v601_v8 = vpop.eup %600  ;;  %620 = vrcp.f32 %v406_v5  ;;  %v404_v9 = vadd.f32 1.0, %v599_v6 }
 0x10c   :  { %v603_v10 = vpop.eup %602  ;;  %622 = vrcp.f32 %v414_v7  ;;  %v412_v11 = vadd.f32 1.0, %v601_v8 }
 0x10d   :  { %v605_v13 = vpop.eup %604  ;;  %624 = vrcp.f32 %v404_v9  ;;  %v409_v14 = vadd.f32 1.0, %v603_v10 }
 0x10e   :  { %v607_v17 = vpop.eup %606  ;;  %626 = vrcp.f32 %v412_v11  ;;  %v417_v18 = vadd.f32 1.0, %v605_v13 }
 0x10f   :  { %v609_v20 = vpop.eup %608  ;;  %628 = vrcp.f32 %v409_v14  ;;  %v407_v21 = vadd.f32 1.0, %v607_v17 }
 0x110   :  { %v611_v22 = vpop.eup %610  ;;  %630 = vrcp.f32 %v417_v18  ;;  %v415_v23 = vadd.f32 1.0, %v609_v20 }
 0x111   :  { %v613_v25 = vpop.eup %612  ;;  %632 = vrcp.f32 %v407_v21  ;;  %v410_v26 = vadd.f32 1.0, %v611_v22 }
 0x112   :  { %v615_v28 = vpop.eup %614  ;;  %453 = vst [vmem:[%s790_s3 + $0x10] sm:$0xff] %v613_v25  ;;  %634 = vrcp.f32 %v415_v23 }
 0x113   :  { %v617_v30 = vpop.eup %616  ;;  %461 = vst [vmem:[%s790_s3 + $0x50] sm:$0xff] %v615_v28  ;;  %636 = vrcp.f32 %v410_v26 }
 0x114   :  { %v619_v16 = vpop.eup %618  ;;  %451 = vst [vmem:[%s790_s3] sm:$0xff] %v617_v30  ;;  %638 = vpow2.f32 %v505_v24 }
 0x115   :  { %v621_v31 = vpop.eup %620  ;;  %459 = vst [vmem:[%s790_s3 + $0x40] sm:$0xff] %v619_v16  ;;  %640 = vpow2.f32 %v495_v27 }
 0x116   :  { %v623_v32 = vpop.eup %622  ;;  %454 = vst [vmem:[%s790_s3 + $0x18] sm:$0xff] %v621_v31  ;;  %642 = vpow2.f32 %v503_v29 }
 0x117   :  { %v625_v33 = vpop.eup %624  ;;  %462 = vst [vmem:[%s790_s3 + $0x58] sm:$0xff] %v623_v32 }
 0x118   :  { %v627_v34 = vpop.eup %626  ;;  %452 = vst [vmem:[%s790_s3 + $0x8] sm:$0xff] %v625_v33 }
 0x119   :  { %v629_v35 = vpop.eup %628  ;;  %460 = vst [vmem:[%s790_s3 + $0x48] sm:$0xff] %v627_v34 }
 0x11a   :  { %v631_v36 = vpop.eup %630  ;;  %457 = vst [vmem:[%s790_s3 + $0x30] sm:$0xff] %v629_v35 }
 0x11b   :  { %v633_v37 = vpop.eup %632  ;;  %465 = vst [vmem:[%s790_s3 + $0x70] sm:$0xff] %v631_v36 }
 0x11c   :  { %v635_v38 = vpop.eup %634  ;;  %455 = vst [vmem:[%s790_s3 + $0x20] sm:$0xff] %v633_v37 }
 0x11d   :  { %v637_v39 = vpop.eup %636  ;;  %463 = vst [vmem:[%s790_s3 + $0x60] sm:$0xff] %v635_v38 }
 0x11e   :  { %v639_v40 = vpop.eup %638  ;;  %458 = vst [vmem:[%s790_s3 + $0x38] sm:$0xff] %v637_v39 }
 0x11f   :  { %v641_v41 = vpop.eup %640  ;;  %v418_v42 = vadd.f32 1.0, %v639_v40 }
 0x120   :  { %v643_v43 = vpop.eup %642  ;;  %v408_v44 = vadd.f32 1.0, %v641_v41 }
 0x121   :  { %644 = vrcp.f32 %v418_v42  ;;  %v416_v45 = vadd.f32 1.0, %v643_v43 }
 0x122   :  { %646 = vrcp.f32 %v408_v44 }
 0x123   :  { %648 = vrcp.f32 %v416_v45 }
 0x12b   :  { %v645_v46 = vpop.eup %644 }
 0x12c   :  { %v647_v47 = vpop.eup %646  ;;  %466 = vst [vmem:[%s790_s3 + $0x78] sm:$0xff] %v645_v46 }
 0x12d   :  { %v649_v48 = vpop.eup %648  ;;  %456 = vst [vmem:[%s790_s3 + $0x28] sm:$0xff] %v647_v47 }
 0x12e   :  { %464 = vst [vmem:[%s790_s3 + $0x68] sm:$0xff] %v649_v48 }

// kernel: gcn_forward.4
= control target key start
LH: loop header
LB: loop body
LE: loop exit
PB: predicated region body
PF: predicated region fallthrough
CT: control target
= control target key end

     0   :  { %s1049_s1 = inlined_call_operand.vmem [shape: bf16[128,128], index: 1, kind: input, shape index: {}]   ;;  %s1050_s0 = inlined_call_operand.vmem [shape: bf16[128,128], index: 0, kind: input, shape index: {}]   ;;  %s1051_s3 = inlined_call_operand.vmem [shape: f32[128,128], index: 3, kind: input, shape index: {}]   ;;  %s1052_s2 = inlined_call_operand.vmem [shape: f32[1,128], index: 2, kind: input, shape index: {}]   ;;  %s1053_s4 = inlined_call_operand.vmem [shape: bf16[128,128], index: 4, kind: output, shape index: {}]  }
   0x1   :  { %v885_v0 = vld [vmem:[%s1049_s1] sm:$0xff]   ;;  %v886_v1 = vld [vmem:[%s1049_s1 + $0x8] sm:$0xff]   ;;  %v887_v2 = vld [vmem:[%s1049_s1 + $0x10] sm:$0xff]  }
   0x2   :  { %765 = vmatprep.subr.bf16.mxu0 %v885_v0  ;;  %v888_v3 = vld [vmem:[%s1049_s1 + $0x18] sm:$0xff]   ;;  %v893_v4 = vld [vmem:[%s1050_s0] sm:$0xff]   ;;  %v890_v6 = vld [vmem:[%s1049_s1 + $0x28] sm:$0xff]  }
   0x3   :  { %766 = vmatpush3.bf16.msra.mxu0 %v885_v0  ;;  %781 = vmatprep.mubr.bf16.mxu0 %v893_v4  ;;  %v889_v5 = vld [vmem:[%s1049_s1 + $0x20] sm:$0xff]   ;;  %v375_v8 = vld [vmem:[%s1051_s3 + $0x8] sm:$0xff]  ;;  %v376_v9 = vld [vmem:[%s1051_s3 + $0x10] sm:$0xff] }
   0x4   :  { %767 = vmatprep.subr.bf16.mxu0 %v886_v1  ;;  %v374_v7 = vld [vmem:[%s1051_s3] sm:$0xff]  ;;  %v377_v11 = vld [vmem:[%s1051_s3 + $0x18] sm:$0xff]  ;;  %v379_v14 = vld [vmem:[%s1051_s3 + $0x28] sm:$0xff] }
   0x5   :  { %v853_v10 = vpack.c.bf16 %v375_v8, %v374_v7  ;;  %v857_v12 = vpack.c.bf16 %v377_v11, %v376_v9  ;;  %v378_v13 = vld [vmem:[%s1051_s3 + $0x20] sm:$0xff]  ;;  %v891_v15 = vld [vmem:[%s1049_s1 + $0x30] sm:$0xff]   ;;  %v381_v18 = vld [vmem:[%s1051_s3 + $0x38] sm:$0xff] }
   0x6   :  { %v861_v16 = vpack.c.bf16 %v379_v14, %v378_v13  ;;  %v380_v17 = vld [vmem:[%s1051_s3 + $0x30] sm:$0xff]  ;;  %v892_v19 = vld [vmem:[%s1049_s1 + $0x38] sm:$0xff]   ;;  %v382_v21 = vld [vmem:[%s1051_s3 + $0x40] sm:$0xff] }
   0x7   :  { %768 = vmatpush3.bf16.msra.mxu0 %v886_v1  ;;  %854 = vmatprep.subr.bf16.mxu1 %v853_v10  ;;  %v865_v20 = vpack.c.bf16 %v381_v18, %v380_v17  ;;  %v383_v22 = vld [vmem:[%s1051_s3 + $0x48] sm:$0xff]  ;;  %v384_v25 = vld [vmem:[%s1051_s3 + $0x50] sm:$0xff]  ;;  %v385_v26 = vld [vmem:[%s1051_s3 + $0x58] sm:$0xff] }
   0x8   :  { %769 = vmatprep.subr.bf16.mxu0 %v887_v2  ;;  %856 = vmatpush3.bf16.msra.mxu1 %v853_v10  ;;  %v869_v23 = vpack.c.bf16 %v383_v22, %v382_v21  ;;  %v894_v24 = vld [vmem:[%s1050_s0 + $0x8] sm:$0xff]   ;;  %v895_v27 = vld [vmem:[%s1050_s0 + $0x10] sm:$0xff]   ;;  %v873_v28 = vpack.c.bf16 %v385_v26, %v384_v25  ;;  %v896_v29 = vld [vmem:[%s1050_s0 + $0x18] sm:$0xff]  }
   0x9   :  { %858 = vmatprep.subr.bf16.mxu1 %v857_v12  ;;  %v897_v30 = vld [vmem:[%s1050_s0 + $0x20] sm:$0xff]   ;;  %v898_v31 = vld [vmem:[%s1050_s0 + $0x28] sm:$0xff]   ;;  %v899_v32 = vld [vmem:[%s1050_s0 + $0x30] sm:$0xff]  }
   0xa   :  { %v900_v33 = vld [vmem:[%s1050_s0 + $0x38] sm:$0xff]   ;;  %v386_v34 = vld [vmem:[%s1051_s3 + $0x60] sm:$0xff]  ;;  %v387_v35 = vld [vmem:[%s1051_s3 + $0x68] sm:$0xff] }
   0xb   :  { %770 = vmatpush3.bf16.msra.mxu0 %v887_v2  ;;  %v877_v36 = vpack.c.bf16 %v387_v35, %v386_v34  ;;  %v388_v37 = vld [vmem:[%s1051_s3 + $0x70] sm:$0xff]  ;;  %v389_v38 = vld [vmem:[%s1051_s3 + $0x78] sm:$0xff]  ;;  %v637_v40 = vld [vmem:[%s1052_s2] ss:$0 sm:$0xff] }
   0xc   :  { %771 = vmatprep.subr.bf16.mxu0 %v888_v3  ;;  %860 = vmatpush3.bf16.msra.mxu1 %v857_v12  ;;  %v881_v39 = vpack.c.bf16 %v389_v38, %v388_v37 }
   0xd   :  { %862 = vmatprep.subr.bf16.mxu1 %v861_v16 }
   0xf   :  { %772 = vmatpush3.bf16.msra.mxu0 %v888_v3 }
  0x10   :  { %773 = vmatprep.subr.bf16.mxu0 %v889_v5  ;;  %864 = vmatpush3.bf16.msra.mxu1 %v861_v16 }
  0x11   :  { %866 = vmatprep.subr.bf16.mxu1 %v865_v20 }
  0x13   :  { %774 = vmatpush3.bf16.msra.mxu0 %v889_v5 }
  0x14   :  { %775 = vmatprep.subr.bf16.mxu0 %v890_v6  ;;  %868 = vmatpush3.bf16.msra.mxu1 %v865_v20 }
  0x15   :  { %870 = vmatprep.subr.bf16.mxu1 %v869_v23 }
  0x17   :  { %776 = vmatpush3.bf16.msra.mxu0 %v890_v6 }
  0x18   :  { %777 = vmatprep.subr.bf16.mxu0 %v891_v15  ;;  %872 = vmatpush3.bf16.msra.mxu1 %v869_v23 }
  0x19   :  { %874 = vmatprep.subr.bf16.mxu1 %v873_v28 }
  0x1b   :  { %778 = vmatpush3.bf16.msra.mxu0 %v891_v15 }
  0x1c   :  { %779 = vmatprep.subr.bf16.mxu0 %v892_v19  ;;  %876 = vmatpush3.bf16.msra.mxu1 %v873_v28 }
  0x1d   :  { %878 = vmatprep.subr.bf16.mxu1 %v877_v36 }
  0x1f   :  { %780 = vmatpush3.bf16.msra.mxu0 %v892_v19 }
  0x20   :  { %880 = vmatpush3.bf16.msra.mxu1 %v877_v36 }
  0x21   :  { %882 = vmatprep.subr.bf16.mxu1 %v881_v39 }
  0x22   :  { %782 = vmatmul.mubr.bf16.vlgmr.msra.gmra.mrb[0].mxu0 %v894_v24 }
  0x23   :  { %785 = vmatprep.mubr.bf16.mxu0 %v895_v27 }
  0x24   :  { %884 = vmatpush3.bf16.msra.mxu1 %v881_v39 }
  0x2a   :  { %786 = vmatmul.mubr.bf16.gmra.mrb[4].mxu0 %v896_v29 }
  0x2b   :  { %789 = vmatprep.mubr.bf16.mxu0 %v897_v30 }
  0x32   :  { %790 = vmatmul.mubr.bf16.gmra.mrb[8].mxu0 %v898_v31 }
  0x33   :  { %793 = vmatprep.mubr.bf16.mxu0 %v899_v32 }
  0x3a   :  { %794 = vmatmul.mubr.bf16.gmra.mrb[12].mxu0 %v900_v33 }
  0xf5   :  { %v783_v41 = vpop.f32.mrb[0].mxu0 }
  0xf6   :  { %v221_v42 = vpop.f32.mrb[1].mxu0  ;;  %v344_v45 = vadd.f32 %v783_v41, %v637_v40 }
  0xf7   :  { %v784_v43 = vpop.f32.mrb[2].mxu0  ;;  %v342_v44 = vadd.f32 %v637_v40, %v221_v42 }
  0xf8   :  { %v224_v46 = vpop.f32.mrb[3].mxu0  ;;  %v345_v49 = vadd.f32 %v784_v43, %v637_v40  ;;  %v360_v51 = vmax.f32 %v344_v45, 0.0 }
  0xf9   :  { %v343_v47 = vadd.f32 %v637_v40, %v224_v46  ;;  %v358_v48 = vmax.f32 %v342_v44, 0.0 }
  0xfa   :  { %v361_v54 = vmax.f32 %v345_v49, 0.0 }
  0xfb   :  { %v359_v50 = vmax.f32 %v343_v47, 0.0  ;;  %829 = vmatprep.mubr.f32.mxu1 %v358_v48 }
  0xfd   :  { %v787_v52 = vpop.f32.mrb[4].mxu0  ;;  %830 = vmatmul.mubr.f32.vlgmr.msra.gmra.mrb[0].mxu1 %v359_v50 }
  0xfe   :  { %v237_v53 = vpop.f32.mrb[5].mxu0  ;;  %832 = vmatprep.mubr.f32.mxu1 %v360_v51  ;;  %v348_v57 = vadd.f32 %v787_v52, %v637_v40 }
  0xff   :  { %v346_v55 = vadd.f32 %v637_v40, %v237_v53  ;;  %v788_v56 = vpop.f32.mrb[6].mxu0 }
 0x100   :  { %v240_v58 = vpop.f32.mrb[7].mxu0  ;;  %v349_v61 = vadd.f32 %v788_v56, %v637_v40  ;;  %v364_v63 = vmax.f32 %v348_v57, 0.0 }
 0x101   :  { %v362_v59 = vmax.f32 %v346_v55, 0.0  ;;  %v347_v60 = vadd.f32 %v637_v40, %v240_v58  ;;  %833 = vmatmul.mubr.f32.gmra.mrb[2].mxu1 %v361_v54 }
 0x102   :  { %v365_v2 = vmax.f32 %v349_v61, 0.0 }
 0x103   :  { %v363_v62 = vmax.f32 %v347_v60, 0.0  ;;  %835 = vmatprep.mubr.f32.mxu1 %v362_v59 }
 0x105   :  { %v791_v0 = vpop.f32.mrb[8].mxu0  ;;  %836 = vmatmul.mubr.f32.gmra.mrb[4].mxu1 %v363_v62 }
 0x106   :  { %v253_v1 = vpop.f32.mrb[9].mxu0  ;;  %838 = vmatprep.mubr.f32.mxu1 %v364_v63  ;;  %v352_v5 = vadd.f32 %v791_v0, %v637_v40 }
 0x107   :  { %v350_v3 = vadd.f32 %v637_v40, %v253_v1  ;;  %v792_v4 = vpop.f32.mrb[10].mxu0 }
 0x108   :  { %v256_v6 = vpop.f32.mrb[11].mxu0  ;;  %v353_v9 = vadd.f32 %v792_v4, %v637_v40  ;;  %v368_v11 = vmax.f32 %v352_v5, 0.0 }
 0x109   :  { %v366_v7 = vmax.f32 %v350_v3, 0.0  ;;  %v351_v8 = vadd.f32 %v637_v40, %v256_v6  ;;  %839 = vmatmul.mubr.f32.gmra.mrb[6].mxu1 %v365_v2 }
 0x10a   :  { %v369_v14 = vmax.f32 %v353_v9, 0.0 }
 0x10b   :  { %v367_v10 = vmax.f32 %v351_v8, 0.0  ;;  %841 = vmatprep.mubr.f32.mxu1 %v366_v7 }
 0x10d   :  { %v795_v12 = vpop.f32.mrb[12].mxu0  ;;  %842 = vmatmul.mubr.f32.gmra.mrb[8].mxu1 %v367_v10 }
 0x10e   :  { %v269_v13 = vpop.f32.mrb[13].mxu0  ;;  %844 = vmatprep.mubr.f32.mxu1 %v368_v11  ;;  %v356_v17 = vadd.f32 %v795_v12, %v637_v40 }
 0x10f   :  { %v354_v15 = vadd.f32 %v637_v40, %v269_v13  ;;  %v796_v16 = vpop.f32.mrb[14].mxu0 }
 0x110   :  { %v272_v18 = vpop.f32.mrb[15].mxu0  ;;  %v357_v21 = vadd.f32 %v796_v16, %v637_v40  ;;  %v372_v23 = vmax.f32 %v356_v17, 0.0 }
 0x111   :  { %v370_v19 = vmax.f32 %v354_v15, 0.0  ;;  %v355_v20 = vadd.f32 %v637_v40, %v272_v18  ;;  %845 = vmatmul.mubr.f32.gmra.mrb[10].mxu1 %v369_v14 }
 0x112   :  { %v373_v24 = vmax.f32 %v357_v21, 0.0 }
 0x113   :  { %v371_v22 = vmax.f32 %v355_v20, 0.0  ;;  %847 = vmatprep.mubr.f32.mxu1 %v370_v19 }
 0x115   :  { %848 = vmatmul.mubr.f32.gmra.mrb[12].mxu1 %v371_v22 }
 0x116   :  { %850 = vmatprep.mubr.f32.mxu1 %v372_v23 }
 0x119   :  { %851 = vmatmul.mubr.f32.gmra.mrb[14].mxu1 %v373_v24 }
 0x1d0   :  { %v831_v25 = vpop.f32.mrb[0].mxu1 }
 0x1d1   :  { %v456_v26 = vpop.f32.mrb[1].mxu1 }
 0x1d2   :  { %v673_v27 = vpack.c.bf16 %v831_v25, %v456_v26 }
 0x1d4   :  { %674 = vst [vmem:[%s1053_s4] sm:$0xff] %v673_v27   ;;  %v834_v28 = vpop.f32.mrb[2].mxu1 }
 0x1d5   :  { %v466_v29 = vpop.f32.mrb[3].mxu1 }
 0x1d6   :  { %v678_v30 = vpack.c.bf16 %v834_v28, %v466_v29 }
 0x1d8   :  { %710 = vst [vmem:[%s1053_s4 + $0x8] sm:$0xff] %v678_v30   ;;  %v837_v31 = vpop.f32.mrb[4].mxu1 }
 0x1d9   :  { %v476_v32 = vpop.f32.mrb[5].mxu1 }
 0x1da   :  { %v683_v33 = vpack.c.bf16 %v837_v31, %v476_v32 }
 0x1dc   :  { %711 = vst [vmem:[%s1053_s4 + $0x10] sm:$0xff] %v683_v33   ;;  %v840_v34 = vpop.f32.mrb[6].mxu1 }
 0x1dd   :  { %v486_v35 = vpop.f32.mrb[7].mxu1 }
 0x1de   :  { %v688_v36 = vpack.c.bf16 %v840_v34, %v486_v35 }
 0x1e0   :  { %712 = vst [vmem:[%s1053_s4 + $0x18] sm:$0xff] %v688_v36   ;;  %v843_v37 = vpop.f32.mrb[8].mxu1 }
 0x1e1   :  { %v496_v38 = vpop.f32.mrb[9].mxu1 }
 0x1e2   :  { %v693_v39 = vpack.c.bf16 %v843_v37, %v496_v38 }
 0x1e4   :  { %713 = vst [vmem:[%s1053_s4 + $0x20] sm:$0xff] %v693_v39   ;;  %v846_v40 = vpop.f32.mrb[10].mxu1 }
 0x1e5   :  { %v506_v41 = vpop.f32.mrb[11].mxu1 }
 0x1e6   :  { %v698_v42 = vpack.c.bf16 %v846_v40, %v506_v41 }
 0x1e8   :  { %714 = vst [vmem:[%s1053_s4 + $0x28] sm:$0xff] %v698_v42   ;;  %v849_v43 = vpop.f32.mrb[12].mxu1 }
 0x1e9   :  { %v516_v44 = vpop.f32.mrb[13].mxu1 }
 0x1ea   :  { %v703_v45 = vpack.c.bf16 %v849_v43, %v516_v44 }
 0x1ec   :  { %715 = vst [vmem:[%s1053_s4 + $0x30] sm:$0xff] %v703_v45   ;;  %v852_v46 = vpop.f32.mrb[14].mxu1 }
 0x1ed   :  { %v526_v47 = vpop.f32.mrb[15].mxu1 }
 0x1ee   :  { %v708_v48 = vpack.c.bf16 %v852_v46, %v526_v47 }
 0x1f0   :  { %716 = vst [vmem:[%s1053_s4 + $0x38] sm:$0xff] %v708_v48  }

</bundles_post_ra>
